<compile_context>
chip_gen: v6e
topology: v6e:2x2x1
jax: 0.10.0
libtpu: 0.0.40
codegen_flags: <defaults>
</compile_context>

<pallas_src>
import functools

import jax
import jax.numpy as jnp
import numpy as np
from jax.experimental import pallas as pl
from jax.experimental.pallas import tpu as pltpu

# CLIP special-token ids (same values as the real CLIP vocab).
START_TOKEN_ID = 49406  # <|startoftext|>
END_TOKEN_ID = 49407    # <|endoftext|>

LANE = 128          # full vreg lane width; text_max_length (77 by default) must fit here
TILE_B_MAX = 2048   # rows per grid step; ~5 MiB double-buffered working set worst case


def _round_up(x: int, m: int) -> int:
    return ((x + m - 1) // m) * m


def _clip_text_pack_kernel(tok_ref, len_ref, out_ref, *, text_max_length: int):
    """Truncate to (max_len-2), write BOS/EOS, zero-pad — VPU selects + one XLU roll.

    tok_ref: [TILE_B, 128] int16, column j = raw token id j (unsigned 16-bit payload)
    len_ref: [TILE_B, 1]   int32, per-row sequence length (pre-clipped by the wrapper)
    """
    tile_b, lane = out_ref.shape

    # int16 transport: widen and recover the unsigned 16-bit token id on the VPU.
    tok = jnp.bitwise_and(tok_ref[...].astype(jnp.int32), 0xFFFF)      # [TILE_B, 128]

    # One-lane shift on the XLU (idle slot in this DMA-bound kernel):
    # after the roll, column j holds tok[j-1]; column 0 is wrap junk, overwritten by BOS.
    tok = pltpu.roll(tok, shift=1, axis=1)

    length = len_ref[...]                                              # [TILE_B, 1]
    trunc = jnp.clip(length, 0, text_max_length - 2)                   # Truncate(max_len-2)
    col = jax.lax.broadcasted_iota(jnp.int32, (tile_b, lane), 1)       # lane index

    out = jnp.where(col == 0, START_TOKEN_ID, tok)                     # AddToken(begin=True)
    out = jnp.where(col == trunc + 1, END_TOKEN_ID, out)               # AddToken(begin=False)
    out = jnp.where(col > trunc + 1, 0, out)                           # PadTransform(pad=0)
    out_ref[...] = out


def _pick_tiles(B: int):
    """tile_b: multiple of 16 (int16 (16,128) packing); >=2 grid steps when possible
    so v7x's two TensorCores both get work; capped at TILE_B_MAX."""
    b16 = _round_up(B, 16)
    tile_b = min(TILE_B_MAX, max(16, _round_up((b16 + 1) // 2, 16)))
    b_pad = _round_up(B, tile_b)
    return tile_b, b_pad


def clip_text_transform(token_ids: jax.Array, lengths: jax.Array, text_max_length: int,
                        *, full_lanes: bool = False):
    """token_ids: [B, T_raw] int (pre-tokenized ids), lengths: [B] int
       -> [B, text_max_length] int32: [BOS, tok_0..tok_{L-1}, EOS, 0, ...] per row.
       full_lanes=True returns the lane-padded [B, 128] buffer (skips the slicing pass)."""
    B, t_raw = token_ids.shape
    assert text_max_length <= LANE, "CLIP text_max_length (default 77) must fit in 128 lanes"

    tile_b, b_pad = _pick_tiles(B)

    # Only the first (text_max_length - 2) raw tokens can ever survive truncation.
    n_tok = min(t_raw, text_max_length - 2)

    # Single pad per stream (no zeros + dynamic-update-slice passes).
    tok16 = jnp.pad(token_ids[:, :n_tok].astype(jnp.int16),
                    ((0, b_pad - B), (0, LANE - n_tok)))
    len32 = jnp.pad(jnp.minimum(lengths, n_tok).astype(jnp.int32).reshape(B, 1),
                    ((0, b_pad - B), (0, 0)))

    bytes_accessed = b_pad * LANE * 2 + b_pad * 4 + b_pad * LANE * 4

    out = pl.pallas_call(
        functools.partial(_clip_text_pack_kernel, text_max_length=text_max_length),
        out_shape=jax.ShapeDtypeStruct((b_pad, LANE), jnp.int32),
        grid=(b_pad // tile_b,),
        in_specs=[pl.BlockSpec((tile_b, LANE), lambda i: (i, 0)),
                  pl.BlockSpec((tile_b, 1), lambda i: (i, 0))],
        out_specs=pl.BlockSpec((tile_b, LANE), lambda i: (i, 0)),
        compiler_params=pltpu.CompilerParams(dimension_semantics=("parallel",)),
        cost_estimate=pl.CostEstimate(flops=0, transcendentals=0,
                                      bytes_accessed=bytes_accessed),
    )(tok16, len32)

    if full_lanes:
        # Rows >= B are [BOS, EOS, 0...] filler; consumers must ignore them.
        return out if b_pad == B else out[:B]
    return out[:B, :text_max_length]


def _reference(token_ids: np.ndarray, lengths: np.ndarray, text_max_length: int) -> np.ndarray:
    B = token_ids.shape[0]
    out = np.zeros((B, text_max_length), dtype=np.int32)
    for b in range(B):
        L = min(int(lengths[b]), text_max_length - 2)
        out[b, 0] = START_TOKEN_ID
        out[b, 1:1 + L] = token_ids[b, :L]
        out[b, 1 + L] = END_TOKEN_ID
    return out


def _run_case(key, B, T_RAW, TEXT_MAX_LENGTH):
    k_tok, k_len = jax.random.split(key)
    token_ids = jax.random.randint(k_tok, (B, T_RAW), 256, 49000, dtype=jnp.int32)
    lengths = jax.random.randint(k_len, (B,), 1, T_RAW + 1, dtype=jnp.int32)

    out = clip_text_transform(token_ids, lengths, TEXT_MAX_LENGTH)
    out = jax.block_until_ready(out)

    expected = _reference(np.asarray(token_ids), np.asarray(lengths), TEXT_MAX_LENGTH)
    np.testing.assert_array_equal(np.asarray(out), expected)
    assert out.shape == (B, TEXT_MAX_LENGTH) and out.dtype == jnp.int32


if __name__ == "__main__":
    # TODO(synk): BPE string tokenization (CLIPTokenizer) cannot be expressed in Pallas;
    # we model its output as deterministic synthetic token ids + lengths.
    key = jax.random.PRNGKey(0)
    k1, k2 = jax.random.split(key)

    # Small sanity case (tiny batch, short max length).
    _run_case(k1, B=8, T_RAW=20, TEXT_MAX_LENGTH=16)
    # CLIP-shaped case: default text_max_length=77, batch not a multiple of the tile,
    # raw lengths exceeding 75 to exercise truncation, 2 grid steps (v7x split).
    _run_case(k2, B=300, T_RAW=100, TEXT_MAX_LENGTH=77)

    print("KERNEL_OK")
</pallas_src>

<mosaic_0001>
module attributes {stable_mosaic.version = 11 : i64} {
  func.func @_clip_text_pack_kernel(%arg0: i32, %arg1: memref<16x128xi16, #tpu.memory_space<vmem>>, %arg2: memref<16x1xi32, #tpu.memory_space<vmem>>, %arg3: memref<16x128xi32, #tpu.memory_space<vmem>>) attributes {dimension_semantics = [#tpu.dimension_semantics<parallel>], iteration_bounds = array<i64: 1>, scalar_prefetch = 0 : i64, scratch_operands = 0 : i64, tpu.core_type = #tpu.core_type<tc>, window_params = [{transform_indices = @transform_0, window_bounds = array<i64: 16, 128>}, {transform_indices = @transform_1, window_bounds = array<i64: 16, 1>}, {transform_indices = @transform_2, window_bounds = array<i64: 16, 128>}]} {
    %c0 = arith.constant 0 : index
    %c0_0 = arith.constant 0 : index
    %0 = vector.load %arg1[%c0, %c0_0] : memref<16x128xi16, #tpu.memory_space<vmem>>, vector<16x128xi16>
    %1 = arith.extsi %0 : vector<16x128xi16> to vector<16x128xi32>
    %c65535_i32 = arith.constant 65535 : i32
    %2 = vector.broadcast %c65535_i32 : i32 to vector<16x128xi32>
    %3 = arith.andi %1, %2 : vector<16x128xi32>
    %c1_i32 = arith.constant 1 : i32
    %4 = tpu.dynamic_rotate %3 by %c1_i32 dim 1 : vector<16x128xi32>, i32 -> vector<16x128xi32>
    %c0_1 = arith.constant 0 : index
    %c0_2 = arith.constant 0 : index
    %5 = vector.load %arg2[%c0_1, %c0_2] : memref<16x1xi32, #tpu.memory_space<vmem>>, vector<16x1xi32>
    %c0_i32 = arith.constant 0 : i32
    %c14_i32 = arith.constant 14 : i32
    %6 = vector.broadcast %c0_i32 : i32 to vector<16x1xi32>
    %7 = arith.maxsi %6, %5 : vector<16x1xi32>
    %8 = vector.broadcast %c14_i32 : i32 to vector<16x1xi32>
    %9 = arith.minsi %8, %7 : vector<16x1xi32>
    %10 = tpu.iota {dimensions = array<i32: 1>} : vector<16x128xi32>
    %c0_i32_3 = arith.constant 0 : i32
    %11 = vector.broadcast %c0_i32_3 : i32 to vector<16x128xi32>
    %12 = arith.cmpi eq, %10, %11 : vector<16x128xi32>
    %c49406_i32 = arith.constant 49406 : i32
    %13 = vector.broadcast %c49406_i32 : i32 to vector<16x128xi32>
    %14 = arith.select %12, %13, %4 : vector<16x128xi1>, vector<16x128xi32>
    %c1_i32_4 = arith.constant 1 : i32
    %15 = vector.broadcast %c1_i32_4 : i32 to vector<16x1xi32>
    %16 = arith.addi %9, %15 : vector<16x1xi32>
    %17 = vector.broadcast %16 : vector<16x1xi32> to vector<16x128xi32>
    %18 = arith.cmpi eq, %10, %17 : vector<16x128xi32>
    %c49407_i32 = arith.constant 49407 : i32
    %19 = vector.broadcast %c49407_i32 : i32 to vector<16x128xi32>
    %20 = arith.select %18, %19, %14 : vector<16x128xi1>, vector<16x128xi32>
    %c1_i32_5 = arith.constant 1 : i32
    %21 = vector.broadcast %c1_i32_5 : i32 to vector<16x1xi32>
    %22 = arith.addi %9, %21 : vector<16x1xi32>
    %23 = vector.broadcast %22 : vector<16x1xi32> to vector<16x128xi32>
    %24 = arith.cmpi sgt, %10, %23 : vector<16x128xi32>
    %c0_i32_6 = arith.constant 0 : i32
    %25 = vector.broadcast %c0_i32_6 : i32 to vector<16x128xi32>
    %26 = arith.select %24, %25, %20 : vector<16x128xi1>, vector<16x128xi32>
    %c0_7 = arith.constant 0 : index
    %c0_8 = arith.constant 0 : index
    %27 = vector.load %arg3[%c0_7, %c0_8] : memref<16x128xi32, #tpu.memory_space<vmem>>, vector<16x128xi32>
    tpu.vector_store %arg3[%c0_7, %c0_8], %26 {strides = array<i32>} : memref<16x128xi32, #tpu.memory_space<vmem>>, vector<16x128xi32>,
    return
  }
  func.func @transform_0(%arg0: i32) -> (i32, i32) {
    %c0_i32 = arith.constant 0 : i32
    %c0_i32_0 = arith.constant 0 : i32
    return %arg0, %c0_i32 : i32, i32
  }
  func.func @transform_1(%arg0: i32) -> (i32, i32) {
    %c0_i32 = arith.constant 0 : i32
    %c0_i32_0 = arith.constant 0 : i32
    return %arg0, %c0_i32 : i32, i32
  }
  func.func @transform_2(%arg0: i32) -> (i32, i32) {
    %c0_i32 = arith.constant 0 : i32
    %c0_i32_0 = arith.constant 0 : i32
    return %arg0, %c0_i32 : i32, i32
  }
}

</mosaic_0001>

<bundles_post_ra>
// kernel: tpu_custom_call.1
= control target key start
LH: loop header
LB: loop body
LE: loop exit
PB: predicated region body
PF: predicated region fallthrough
CT: control target
= control target key end

     0   :  { %v103_v3 = vmov 0   ;;  %s135_s0 = inlined_call_operand.vmem [shape: s16[16,128], index: 0, kind: input, shape index: {}]   ;;  %s136_s1 = inlined_call_operand.vmem [shape: s32[16,1], index: 1, kind: input, shape index: {}]   ;;  %s137_s2 = inlined_call_operand.hbm [shape: s32[16,128], index: 2, kind: output, shape index: {}]  }
   0x1   :  { %v22_v0 = vld [vmem:[%s136_s1] sm:$0xff]  ;;  %v23_v1 = vld [vmem:[%s136_s1 + $0x8] sm:$0xff]  ;;  %80 = vset.pattern.permute.xlu0 %v103_v3 }
   0x2   :  { %v72_v2 = vld [vmem:[%s135_s0] sm:$0xff]   ;;  %vm24_vm0 = vcmp.gt.s32.totalorder %v22_v0, 0  ;;  %vm26_vm1 = vcmp.gt.s32.totalorder %v23_v1, 0 }
   0x3   :  { %v73_v4 = vunpack.c.l.b16 %v72_v2  ;;  %v74_v5 = vunpack.c.h.b16 %v72_v2 }
   0x4   :  { %7 = vsyncpa [#allocation3], 0  ;;  %v25_v6 = vsel %vm24_vm0, %v22_v0, 0  ;;  %v27_v7 = vsel %vm26_vm1, %v23_v1, 0  ;;  %s104_s1 = smov 1   ;;  %v32_v14 = vlaneseq  ;;  %s105_s0 = smov [#allocation2]  }
   0x5   :  { %vm28_vm2 = vcmp.lt.s32.totalorder %v25_v6, 14  ;;  %vm30_vm3 = vcmp.lt.s32.totalorder %v27_v7, 14  ;;  %v16_v8 = vand.u32 65535, %v73_v4  ;;  %v17_v12 = vand.u32 65535, %v74_v5  ;;  %s60_s15 = sshll.u32 %s105_s0, 4  ;;  %s61_s15 = int_to_ptr.vmem [resolvable:$true] %s60_s15 }
   0x6   :  { %v29_v9 = vsel %vm28_vm2, %v25_v6, 14  ;;  %v31_v10 = vsel %vm30_vm3, %v27_v7, 14  ;;  %v33_v15 = vand.u32 127, %v32_v14  ;;  %s81_s16 = scalar_lea.vmem %s61_s15, 256  ;;  %p86_p1 = scmp.lt.s32.totalorder %s61_s15, %s61_s15 }
   0x7   :  { %v37_v11 = vadd.s32 1, %v29_v9  ;;  %18 = vrot.lane.b32.xlu1 %v16_v8, %s104_s1  ;;  %v38_v13 = vadd.s32 1, %v31_v10  ;;  %p82_p0 = scmp.ne.s32.totalorder %s61_s15, %s81_s16  ;;  %p87_p2 = scmp.lt.s32.totalorder %s81_s16, %s81_s16 }
   0x8   :  { %vm34_vm4 = vcmp.eq.s32.totalorder %v33_v15, 0 }
   0x9   :  { %40 = vperm.xlu0 %80, %v37_v11   ;;  %p88_p3 = por %p87_p2, %p86_p1 }
   0xb   :  { %20 = vrot.lane.b32.xlu1 %v17_v12, %s104_s1  ;;  %p89_p4 = pnand %p88_p3, %p82_p0 }
   0xd   :  { %43 = vperm.xlu0 %80, %v38_v13  }
  0x79   :  { %v19_v16 = vpop.permute.xlu1 %18 }
  0x7a   :  { %v35_v17 = vsel %vm34_vm4, 49406, %v19_v16 }
  0x7d   :  { %v21_v19 = vpop.permute.xlu1 %20 }
  0x7e   :  { %v36_v22 = vsel %vm34_vm4, 49406, %v21_v19 }
  0x84   :  { %v41_v18 = vpop.permute.xlu0 %40 }
  0x85   :  { %vm45_vm5 = vcmp.eq.s32.totalorder %v33_v15, %v41_v18  ;;  %vm49_vm6 = vcmp.gt.s32.totalorder %v33_v15, %v41_v18 }
  0x86   :  { %v47_v20 = vsel %vm45_vm5, 49407, %v35_v17 }
  0x87   :  { %v51_v21 = vsel %vm49_vm6, 0, %v47_v20 }
  0x88   :  { %53 = vst [vmem:[#allocation2] sm:$0xff] %v51_v21  ;;  %v44_v23 = vpop.permute.xlu0 %43 }
  0x89   :  { %vm46_vm7 = vcmp.eq.s32.totalorder %v33_v15, %v44_v23  ;;  %vm50_vm8 = vcmp.gt.s32.totalorder %v33_v15, %v44_v23 }
  0x8a   :  { %v48_v24 = vsel %vm46_vm7, 49407, %v36_v22 }
  0x8b   :  { %v52_v25 = vsel %vm50_vm8, 0, %v48_v24 }
  0x8c   :  { %54 = vst [vmem:[#allocation2 + $0x8] sm:$0xff] %v52_v25 }
  0x8d   :  { %92 = shalt.err (!%p89_p4)
}
  0x8e   :  { %s106_s17 = smov 128   ;;  %s107_s18 = smov 8  }
  0x8f   :  { %66 = dma.vmem_to_hbm [thread:$0]  %s61_s15, 256, %s137_s2, [#allocation3], %s106_s17, %s106_s17, %s107_s18  }
  0x90   :  { %101 = dma.done.wait [#allocation3], 256  }
  0x91   :  { %102 = vsyncadd [#allocation3], 4294967040 }
  0x92   :  { %70 = vsyncpa [#allocation3], 1 }

</bundles_post_ra>
